<compile_context>
chip_gen: v7x
topology: tpu7x:2x2x1
jax: 0.10.0
libtpu: 0.0.40
codegen_flags: <defaults>
</compile_context>

<pallas_src>
import functools

import jax
import jax.numpy as jnp
from jax.experimental import pallas as pl
from jax.experimental.pallas import tpu as pltpu


# ----------------------------------------------------------------------------
# helpers
# ----------------------------------------------------------------------------

_LANE = 128
_SUBLANE = 8
_MAX_ROW_TILE = 2048                     # ~5 MiB double-buffered working set
_VMEM_LIMIT = 32 * 1024 * 1024


def _round_up(x: int, m: int) -> int:
    return ((x + m - 1) // m) * m


def _pad_w(w, rows, cols):
    """Zero-pad a [r,c] weight to [rows,cols] and store bf16 (MXU operand)."""
    return jnp.pad(w, ((0, rows - w.shape[0]), (0, cols - w.shape[1]))).astype(jnp.bfloat16)


def _pad_b(b, cols):
    """Zero-pad a [c] bias to a lane-dense [1, cols] f32 row (epilogue stays f32)."""
    return jnp.pad(b, (0, cols - b.shape[0])).reshape(1, cols).astype(jnp.float32)


# ----------------------------------------------------------------------------
# Pallas kernels
# ----------------------------------------------------------------------------

def _linear_relu_kernel(x_ref, w_ref, b_ref, o_ref):
    """o = relu(x @ w + b). x:[T,Fp] bf16, w:[Fp,Hp] bf16, b:[1,Hp] f32, o bf16."""
    y = jnp.dot(x_ref[...], w_ref[...], preferred_element_type=jnp.float32)
    o_ref[...] = jnp.maximum(y + b_ref[...], 0.0).astype(o_ref.dtype)


def _news_fused_kernel(*refs, with_hidden, with_loss, n_rows, n_classes, tile_n):
    """Fused news branch: encoder Linear+ReLU -> MLP head [-> CE partial sums].

    Row-tiled over nodes (fully parallel grid); weights resident via
    index_map (0,0).  When with_loss, each tile writes its raw CE sum into
    its own (8,128) block (reduced + divided by N in the wrapper).
    """
    if with_loss:
        (x_ref, we_ref, be_ref, w1_ref, b1_ref, w2_ref, b2_ref, lab_ref) = refs[:8]
        outs = refs[8:]
    else:
        (x_ref, we_ref, be_ref, w1_ref, b1_ref, w2_ref, b2_ref) = refs[:7]
        outs = refs[7:]

    o = 0
    hid_ref = None
    if with_hidden:
        hid_ref = outs[o]
        o += 1
    logits_ref = outs[o]
    o += 1
    loss_ref = outs[o] if with_loss else None

    # ---- entity encoder (news type): relu(x @ We + be) --------------------
    h = jnp.dot(x_ref[...], we_ref[...], preferred_element_type=jnp.float32)
    h = jnp.maximum(h + be_ref[...], 0.0)                      # f32 epilogue
    if with_hidden:
        hid_ref[...] = h.astype(hid_ref.dtype)                 # bf16 slab

    # ---- news_classifier: Linear -> ReLU -> (Dropout=id) -> Linear --------
    z = jnp.dot(h.astype(jnp.bfloat16), w1_ref[...],
                preferred_element_type=jnp.float32)
    z = jnp.maximum(z + b1_ref[...], 0.0)
    logits = jnp.dot(z.astype(jnp.bfloat16), w2_ref[...],
                     preferred_element_type=jnp.float32) + b2_ref[...]
    logits_ref[...] = logits.astype(logits_ref.dtype)          # bf16 lane-dense slab

    # ---- cross-entropy partial sums (valid class cols + valid rows) -------
    if with_loss:
        i = pl.program_id(0)
        col = jax.lax.broadcasted_iota(jnp.int32, logits.shape, 1)       # [T, Cp]
        cmask = col < n_classes
        masked = jnp.where(cmask, logits, jnp.float32(-1e30))
        m = jnp.max(masked, axis=-1, keepdims=True)
        lse = m + jnp.log(jnp.sum(jnp.where(cmask, jnp.exp(masked - m), 0.0),
                                  axis=-1, keepdims=True))               # [T,1]
        labels = lab_ref[...]                                            # [T,1] i32
        # NOTE: labels assumed in [0, n_classes); no ignore_index handling.
        picked = jnp.sum(jnp.where(col == labels, logits, 0.0),
                         axis=-1, keepdims=True)                         # [T,1]
        row = i * tile_n + jax.lax.broadcasted_iota(jnp.int32, (tile_n, 1), 0)
        per_row = jnp.where(row < n_rows, lse - picked, 0.0)
        partial = jnp.sum(per_row, axis=0, keepdims=True)                # [1,1] raw sum
        loss_ref[...] = jnp.broadcast_to(partial, loss_ref.shape)


# ----------------------------------------------------------------------------
# LESS4FD model (JAX/Pallas)
# ----------------------------------------------------------------------------

class LESS4FDModelPallas:
    def __init__(self, key, news_feat_dim, entity_feat_dim,
                 hidden_channels=32, num_entities=100, num_classes=2,
                 num_entity_types=4):
        self.hidden_channels = hidden_channels
        self.num_classes = num_classes
        self.num_entity_types = num_entity_types
        self.num_entities = num_entities

        h = hidden_channels
        h2 = hidden_channels // 2
        self.H, self.H2, self.C = h, h2, num_classes
        self.Fp_news = _round_up(news_feat_dim, _LANE)
        self.Fp_ent = _round_up(entity_feat_dim, _LANE)
        self.Hp = _round_up(h, _LANE)
        self.H2p = _round_up(h2, _LANE)
        self.Cp = _round_up(num_classes, _LANE)

        ks = jax.random.split(key, 10)

        def init_w(k, fan_in, shape):
            bound = 1.0 / float(fan_in) ** 0.5
            return jax.random.uniform(k, shape, jnp.float32, -bound, bound)

        # Synthetic stand-in for EntityEncoder: per-type Linear + ReLU.
        # Padded to lane-dense shapes ONCE at init; weights bf16, biases f32.
        self.enc_news_w_p = _pad_w(init_w(ks[0], news_feat_dim,
                                          (news_feat_dim, h)),
                                   self.Fp_news, self.Hp)
        self.enc_news_b_p = _pad_b(init_w(ks[1], news_feat_dim, (h,)), self.Hp)
        self.enc_ent_w_p = _pad_w(init_w(ks[2], entity_feat_dim,
                                         (entity_feat_dim, h)),
                                  self.Fp_ent, self.Hp)
        self.enc_ent_b_p = _pad_b(init_w(ks[3], entity_feat_dim, (h,)), self.Hp)

        # news_classifier = Linear(h,h//2) -> ReLU -> Dropout -> Linear(h//2,C)
        self.news_w1_p = _pad_w(init_w(ks[4], h, (h, h2)), self.Hp, self.H2p)
        self.news_b1_p = _pad_b(init_w(ks[5], h, (h2,)), self.H2p)
        self.news_w2_p = _pad_w(init_w(ks[6], h2, (h2, num_classes)),
                                self.H2p, self.Cp)
        self.news_b2_p = _pad_b(init_w(ks[7], h2, (num_classes,)), self.Cp)

        # entity_classifier / entity_vocab_predictor exist in the PyTorch
        # __init__ but are unused by the classification branch.
        self.ent_w1 = init_w(ks[8], h, (h, h2))
        self.ent_w2 = init_w(ks[9], h2, (h2, num_entity_types))
        # TODO(synk): entity_classifier / entity_vocab_predictor heads are
        # only exercised by pretext/contrastive paths (external modules).

    # ------------------------------------------------------------------ util
    @staticmethod
    def _row_tile(n):
        """Pick (tile, n_pad) so padding overshoot stays small (<~12%)."""
        n = max(n, 1)
        if n <= _MAX_ROW_TILE:
            tile = _round_up(n, _SUBLANE)
            return tile, tile
        candidates = (_MAX_ROW_TILE, _MAX_ROW_TILE // 2,
                      _MAX_ROW_TILE // 4, _MAX_ROW_TILE // 8)
        for tile in candidates:
            n_pad = _round_up(n, tile)
            if (n_pad - n) / n <= 0.125:
                return tile, n_pad
        tile = candidates[-1]
        return tile, _round_up(n, tile)

    # ------------------------------------------------- entity-type encoder
    def _encode(self, x, w_p, b_p):
        n, f = x.shape
        fp, hp = w_p.shape
        tile, n_pad = self._row_tile(n)
        x_p = jnp.pad(x, ((0, n_pad - n), (0, fp - f))).astype(jnp.bfloat16)
        out = pl.pallas_call(
            _linear_relu_kernel,
            grid=(n_pad // tile,),
            in_specs=[
                pl.BlockSpec((tile, fp), lambda i: (i, 0)),
                pl.BlockSpec((fp, hp), lambda i: (0, 0)),     # weights resident
                pl.BlockSpec((1, hp), lambda i: (0, 0)),
            ],
            out_specs=pl.BlockSpec((tile, hp), lambda i: (i, 0)),
            out_shape=jax.ShapeDtypeStruct((n_pad, hp), jnp.bfloat16),
            compiler_params=pltpu.CompilerParams(
                dimension_semantics=("parallel",),
                vmem_limit_bytes=_VMEM_LIMIT),
        )(x_p, w_p, b_p)
        return out[:n, :self.H].astype(jnp.float32)

    # --------------------------------------------------- fused news branch
    def _news_branch(self, x_news, news_labels, return_hidden):
        n, f = x_news.shape
        fp, hp, h2p, cp = self.Fp_news, self.Hp, self.H2p, self.Cp
        tile, n_pad = self._row_tile(n)
        grid = n_pad // tile
        with_loss = news_labels is not None
        with_hidden = bool(return_hidden)

        x_p = jnp.pad(x_news, ((0, n_pad - n), (0, fp - f))).astype(jnp.bfloat16)

        in_specs = [
            pl.BlockSpec((tile, fp), lambda i: (i, 0)),        # news features
            pl.BlockSpec((fp, hp), lambda i: (0, 0)),          # encoder W (resident)
            pl.BlockSpec((1, hp), lambda i: (0, 0)),
            pl.BlockSpec((hp, h2p), lambda i: (0, 0)),         # head W1
            pl.BlockSpec((1, h2p), lambda i: (0, 0)),
            pl.BlockSpec((h2p, cp), lambda i: (0, 0)),         # head W2
            pl.BlockSpec((1, cp), lambda i: (0, 0)),
        ]
        args = [x_p, self.enc_news_w_p, self.enc_news_b_p,
                self.news_w1_p, self.news_b1_p, self.news_w2_p, self.news_b2_p]
        if with_loss:
            lab = news_labels.astype(jnp.int32).reshape(-1, 1)
            lab_p = jnp.pad(lab, ((0, n_pad - n), (0, 0)))
            in_specs.append(pl.BlockSpec((tile, 1), lambda i: (i, 0)))
            args.append(lab_p)

        out_specs = []
        out_shape = []
        if with_hidden:
            out_specs.append(pl.BlockSpec((tile, hp), lambda i: (i, 0)))
            out_shape.append(jax.ShapeDtypeStruct((n_pad, hp), jnp.bfloat16))
        out_specs.append(pl.BlockSpec((tile, cp), lambda i: (i, 0)))
        out_shape.append(jax.ShapeDtypeStruct((n_pad, cp), jnp.bfloat16))
        if with_loss:
            out_specs.append(pl.BlockSpec((_SUBLANE, _LANE), lambda i: (i, 0)))
            out_shape.append(jax.ShapeDtypeStruct((grid * _SUBLANE, _LANE),
                                                  jnp.float32))

        flops = 2 * n_pad * (fp * hp + hp * h2p + h2p * cp)
        transcendentals = n_pad * cp if with_loss else 0
        bytes_in = sum(int(a.size) * a.dtype.itemsize for a in args)
        bytes_out = sum(int(jnp.prod(jnp.array(s.shape))) * jnp.dtype(s.dtype).itemsize
                        for s in out_shape)
        cost = pl.CostEstimate(flops=int(flops),
                               transcendentals=int(transcendentals),
                               bytes_accessed=int(bytes_in + bytes_out))

        kernel = functools.partial(_news_fused_kernel,
                                   with_hidden=with_hidden,
                                   with_loss=with_loss,
                                   n_rows=n, n_classes=self.C, tile_n=tile)
        results = pl.pallas_call(
            kernel,
            grid=(grid,),
            in_specs=in_specs,
            out_specs=tuple(out_specs),
            out_shape=tuple(out_shape),
            compiler_params=pltpu.CompilerParams(
                dimension_semantics=("parallel",),             # per-tile partials; no
                vmem_limit_bytes=_VMEM_LIMIT),                 # cross-iter accumulator
            cost_estimate=cost,
        )(*args)

        idx = 0
        hidden = None
        if with_hidden:
            hidden = results[idx][:n, :self.H].astype(jnp.float32)
            idx += 1
        logits = results[idx][:n, :self.C].astype(jnp.float32)
        idx += 1
        loss = None
        if with_loss:
            partials = results[idx].reshape(grid, _SUBLANE, _LANE)[:, 0, 0]
            loss = jnp.sum(partials) / jnp.float32(n)          # mean CE, divide once
        return hidden, logits, loss

    # -------------------------------------------------------------- forward
    def forward(self, x_dict, edge_index_dict, task='classification',
                entity_types=None, news_labels=None, return_embeddings=False):
        outputs = {'embeddings': None, 'losses': {}, 'predictions': {}}
        h_dict = {}

        if task in ('classification', 'all') and 'news' in x_dict:
            hidden, logits, loss = self._news_branch(
                x_dict['news'], news_labels, return_hidden=return_embeddings)
            if hidden is not None:
                h_dict['news'] = hidden
            outputs['predictions']['news_logits'] = logits
            if loss is not None:
                outputs['losses']['classification'] = loss

        if return_embeddings:
            if 'news' in x_dict and 'news' not in h_dict:
                h_dict['news'] = self._encode(x_dict['news'],
                                              self.enc_news_w_p,
                                              self.enc_news_b_p)
            if 'entity' in x_dict:
                h_dict['entity'] = self._encode(x_dict['entity'],
                                                self.enc_ent_w_p,
                                                self.enc_ent_b_p)
            outputs['embeddings'] = h_dict

        # TODO(synk): 'contrastive' / 'pretext' / 'all' total-loss branches
        # depend on ContrastiveModule / PretextTaskManager (external modules
        # not defined in the reference file).
        return outputs


# ----------------------------------------------------------------------------
# Demo
# ----------------------------------------------------------------------------

if __name__ == "__main__":
    key = jax.random.PRNGKey(0)
    k_model, k_news, k_ent, k_lab = jax.random.split(key, 4)

    num_news, num_entity_nodes = 8, 16
    news_feat_dim, entity_feat_dim = 48, 64
    hidden_channels, num_classes = 32, 2

    model = LESS4FDModelPallas(k_model, news_feat_dim, entity_feat_dim,
                               hidden_channels=hidden_channels,
                               num_classes=num_classes)

    x_dict = {
        'news': jax.random.normal(k_news, (num_news, news_feat_dim),
                                  jnp.float32),
        'entity': jax.random.normal(k_ent, (num_entity_nodes, entity_feat_dim),
                                    jnp.float32),
    }
    # edges unused by the classification branch but kept for interface parity
    edge_index_dict = {
        ('news', 'connected_to', 'entity'): jnp.zeros((2, 4), jnp.int32),
    }
    news_labels = jax.random.randint(k_lab, (num_news,), 0, num_classes)

    # Training-style call: loss + embeddings (with_hidden / with_loss variant).
    outputs = model.forward(x_dict, edge_index_dict, task='classification',
                            news_labels=news_labels, return_embeddings=True)
    logits = jax.block_until_ready(outputs['predictions']['news_logits'])
    loss = jax.block_until_ready(outputs['losses']['classification'])
    emb_news = jax.block_until_ready(outputs['embeddings']['news'])
    emb_ent = jax.block_until_ready(outputs['embeddings']['entity'])

    # Inference-style call: logits only (no CE block, no hidden slab).
    outputs_inf = model.forward(x_dict, edge_index_dict, task='classification')
    logits_inf = jax.block_until_ready(outputs_inf['predictions']['news_logits'])

    assert logits.shape == (num_news, num_classes)
    assert logits_inf.shape == (num_news, num_classes)
    assert emb_news.shape == (num_news, hidden_channels)
    assert emb_ent.shape == (num_entity_nodes, hidden_channels)
    assert bool(jnp.isfinite(loss))
    assert bool(jnp.all(jnp.isfinite(logits)))
    assert bool(jnp.all(jnp.isfinite(logits_inf)))
    print("KERNEL_OK")
</pallas_src>

<mosaic_0001>
module attributes {stable_mosaic.version = 11 : i64} {
  func.func @_news_fused_kernel(%arg0: i32, %arg1: memref<8x128xbf16, #tpu.memory_space<vmem>>, %arg2: memref<128x128xbf16, #tpu.memory_space<vmem>>, %arg3: memref<1x128xf32, #tpu.memory_space<vmem>>, %arg4: memref<128x128xbf16, #tpu.memory_space<vmem>>, %arg5: memref<1x128xf32, #tpu.memory_space<vmem>>, %arg6: memref<128x128xbf16, #tpu.memory_space<vmem>>, %arg7: memref<1x128xf32, #tpu.memory_space<vmem>>, %arg8: memref<8x1xi32, #tpu.memory_space<vmem>>, %arg9: memref<8x128xbf16, #tpu.memory_space<vmem>>, %arg10: memref<8x128xbf16, #tpu.memory_space<vmem>>, %arg11: memref<8x128xf32, #tpu.memory_space<vmem>>) attributes {dimension_semantics = [#tpu.dimension_semantics<parallel>], iteration_bounds = array<i64: 1>, scalar_prefetch = 0 : i64, scratch_operands = 0 : i64, tpu.core_type = #tpu.core_type<tc>, window_params = [{transform_indices = @transform_0, window_bounds = array<i64: 8, 128>}, {pipeline_mode = #tpu.pipeline_mode<synchronous>, transform_indices = @transform_1, window_bounds = array<i64: 128, 128>}, {pipeline_mode = #tpu.pipeline_mode<synchronous>, transform_indices = @transform_2, window_bounds = array<i64: 1, 128>}, {pipeline_mode = #tpu.pipeline_mode<synchronous>, transform_indices = @transform_3, window_bounds = array<i64: 128, 128>}, {pipeline_mode = #tpu.pipeline_mode<synchronous>, transform_indices = @transform_4, window_bounds = array<i64: 1, 128>}, {pipeline_mode = #tpu.pipeline_mode<synchronous>, transform_indices = @transform_5, window_bounds = array<i64: 128, 128>}, {pipeline_mode = #tpu.pipeline_mode<synchronous>, transform_indices = @transform_6, window_bounds = array<i64: 1, 128>}, {transform_indices = @transform_7, window_bounds = array<i64: 8, 1>}, {transform_indices = @transform_8, window_bounds = array<i64: 8, 128>}, {transform_indices = @transform_9, window_bounds = array<i64: 8, 128>}, {transform_indices = @transform_10, window_bounds = array<i64: 8, 128>}]} {
    %c0 = arith.constant 0 : index
    %c0_0 = arith.constant 0 : index
    %0 = vector.load %arg1[%c0, %c0_0] : memref<8x128xbf16, #tpu.memory_space<vmem>>, vector<8x128xbf16>
    %c0_1 = arith.constant 0 : index
    %c0_2 = arith.constant 0 : index
    %1 = vector.load %arg2[%c0_1, %c0_2] : memref<128x128xbf16, #tpu.memory_space<vmem>>, vector<128x128xbf16>
    %cst = arith.constant dense<0.000000e+00> : vector<8x128xf32>
    %2 = tpu.matmul %0, %1, %cst {dimension_numbers = #tpu.dot_dimension_numbers<[1], [0], [0], [1], [0, 0, 1, 1], [], []>} : vector<8x128xbf16>, vector<128x128xbf16>, vector<8x128xf32> -> vector<8x128xf32>
    %c0_3 = arith.constant 0 : index
    %c0_4 = arith.constant 0 : index
    %3 = vector.load %arg3[%c0_3, %c0_4] : memref<1x128xf32, #tpu.memory_space<vmem>>, vector<1x128xf32>
    %4 = vector.broadcast %3 : vector<1x128xf32> to vector<8x128xf32>
    %5 = arith.addf %2, %4 : vector<8x128xf32>
    %cst_5 = arith.constant 0.000000e+00 : f32
    %6 = vector.broadcast %cst_5 : f32 to vector<8x128xf32>
    %7 = arith.maximumf %5, %6 : vector<8x128xf32>
    %8 = arith.truncf %7 : vector<8x128xf32> to vector<8x128xbf16>
    %c0_6 = arith.constant 0 : index
    %c0_7 = arith.constant 0 : index
    %9 = vector.load %arg9[%c0_6, %c0_7] : memref<8x128xbf16, #tpu.memory_space<vmem>>, vector<8x128xbf16>
    tpu.vector_store %arg9[%c0_6, %c0_7], %8 {strides = array<i32>} : memref<8x128xbf16, #tpu.memory_space<vmem>>, vector<8x128xbf16>,
    %10 = arith.truncf %7 : vector<8x128xf32> to vector<8x128xbf16>
    %c0_8 = arith.constant 0 : index
    %c0_9 = arith.constant 0 : index
    %11 = vector.load %arg4[%c0_8, %c0_9] : memref<128x128xbf16, #tpu.memory_space<vmem>>, vector<128x128xbf16>
    %cst_10 = arith.constant dense<0.000000e+00> : vector<8x128xf32>
    %12 = tpu.matmul %10, %11, %cst_10 {dimension_numbers = #tpu.dot_dimension_numbers<[1], [0], [0], [1], [0, 0, 1, 1], [], []>} : vector<8x128xbf16>, vector<128x128xbf16>, vector<8x128xf32> -> vector<8x128xf32>
    %c0_11 = arith.constant 0 : index
    %c0_12 = arith.constant 0 : index
    %13 = vector.load %arg5[%c0_11, %c0_12] : memref<1x128xf32, #tpu.memory_space<vmem>>, vector<1x128xf32>
    %14 = vector.broadcast %13 : vector<1x128xf32> to vector<8x128xf32>
    %15 = arith.addf %12, %14 : vector<8x128xf32>
    %cst_13 = arith.constant 0.000000e+00 : f32
    %16 = vector.broadcast %cst_13 : f32 to vector<8x128xf32>
    %17 = arith.maximumf %15, %16 : vector<8x128xf32>
    %18 = arith.truncf %17 : vector<8x128xf32> to vector<8x128xbf16>
    %c0_14 = arith.constant 0 : index
    %c0_15 = arith.constant 0 : index
    %19 = vector.load %arg6[%c0_14, %c0_15] : memref<128x128xbf16, #tpu.memory_space<vmem>>, vector<128x128xbf16>
    %cst_16 = arith.constant dense<0.000000e+00> : vector<8x128xf32>
    %20 = tpu.matmul %18, %19, %cst_16 {dimension_numbers = #tpu.dot_dimension_numbers<[1], [0], [0], [1], [0, 0, 1, 1], [], []>} : vector<8x128xbf16>, vector<128x128xbf16>, vector<8x128xf32> -> vector<8x128xf32>
    %c0_17 = arith.constant 0 : index
    %c0_18 = arith.constant 0 : index
    %21 = vector.load %arg7[%c0_17, %c0_18] : memref<1x128xf32, #tpu.memory_space<vmem>>, vector<1x128xf32>
    %22 = vector.broadcast %21 : vector<1x128xf32> to vector<8x128xf32>
    %23 = arith.addf %20, %22 : vector<8x128xf32>
    %24 = arith.truncf %23 : vector<8x128xf32> to vector<8x128xbf16>
    %c0_19 = arith.constant 0 : index
    %c0_20 = arith.constant 0 : index
    %25 = vector.load %arg10[%c0_19, %c0_20] : memref<8x128xbf16, #tpu.memory_space<vmem>>, vector<8x128xbf16>
    tpu.vector_store %arg10[%c0_19, %c0_20], %24 {strides = array<i32>} : memref<8x128xbf16, #tpu.memory_space<vmem>>, vector<8x128xbf16>,
    %26 = tpu.iota {dimensions = array<i32: 1>} : vector<8x128xi32>
    %c2_i32 = arith.constant 2 : i32
    %27 = vector.broadcast %c2_i32 : i32 to vector<8x128xi32>
    %28 = arith.cmpi slt, %26, %27 : vector<8x128xi32>
    %cst_21 = arith.constant -1.000000e+30 : f32
    %29 = vector.broadcast %cst_21 : f32 to vector<8x128xf32>
    %30 = arith.select %28, %23, %29 : vector<8x128xi1>, vector<8x128xf32>
    %cst_22 = arith.constant dense<0xFF800000> : vector<8xf32>
    %31 = vector.multi_reduction <maximumf>, %30, %cst_22 [1] : vector<8x128xf32> to vector<8xf32>
    %32 = vector.shape_cast %31 : vector<8xf32> to vector<8x1xf32>
    %33 = vector.broadcast %32 : vector<8x1xf32> to vector<8x128xf32>
    %34 = arith.subf %30, %33 : vector<8x128xf32>
    %35 = math.exp %34 : vector<8x128xf32>
    %cst_23 = arith.constant 0.000000e+00 : f32
    %36 = vector.broadcast %cst_23 : f32 to vector<8x128xf32>
    %37 = arith.select %28, %35, %36 : vector<8x128xi1>, vector<8x128xf32>
    %cst_24 = arith.constant dense<0.000000e+00> : vector<8xf32>
    %38 = vector.multi_reduction <add>, %37, %cst_24 [1] : vector<8x128xf32> to vector<8xf32>
    %39 = vector.shape_cast %38 : vector<8xf32> to vector<8x1xf32>
    %40 = math.log %39 : vector<8x1xf32>
    %41 = arith.addf %32, %40 : vector<8x1xf32>
    %c0_25 = arith.constant 0 : index
    %c0_26 = arith.constant 0 : index
    %42 = vector.load %arg8[%c0_25, %c0_26] : memref<8x1xi32, #tpu.memory_space<vmem>>, vector<8x1xi32>
    %43 = vector.broadcast %42 : vector<8x1xi32> to vector<8x128xi32>
    %44 = arith.cmpi eq, %26, %43 : vector<8x128xi32>
    %cst_27 = arith.constant 0.000000e+00 : f32
    %45 = vector.broadcast %cst_27 : f32 to vector<8x128xf32>
    %46 = arith.select %44, %23, %45 : vector<8x128xi1>, vector<8x128xf32>
    %cst_28 = arith.constant dense<0.000000e+00> : vector<8xf32>
    %47 = vector.multi_reduction <add>, %46, %cst_28 [1] : vector<8x128xf32> to vector<8xf32>
    %48 = vector.shape_cast %47 : vector<8xf32> to vector<8x1xf32>
    %c8_i32 = arith.constant 8 : i32
    %49 = arith.muli %arg0, %c8_i32 : i32
    %50 = tpu.iota {dimensions = array<i32: 0>} : vector<8x1xi32>
    %51 = vector.broadcast %49 : i32 to vector<8x1xi32>
    %52 = arith.addi %51, %50 : vector<8x1xi32>
    %c8_i32_29 = arith.constant 8 : i32
    %53 = vector.broadcast %c8_i32_29 : i32 to vector<8x1xi32>
    %54 = arith.cmpi slt, %52, %53 : vector<8x1xi32>
    %55 = arith.subf %41, %48 : vector<8x1xf32>
    %cst_30 = arith.constant 0.000000e+00 : f32
    %56 = vector.broadcast %cst_30 : f32 to vector<8x1xf32>
    %57 = arith.select %54, %55, %56 : vector<8x1xi1>, vector<8x1xf32>
    %cst_31 = arith.constant dense<0.000000e+00> : vector<1xf32>
    %58 = vector.multi_reduction <add>, %57, %cst_31 [0] : vector<8x1xf32> to vector<1xf32>
    %59 = vector.shape_cast %58 : vector<1xf32> to vector<1x1xf32>
    %60 = vector.shape_cast %59 : vector<1x1xf32> to vector<1x1xf32>
    %61 = vector.broadcast %60 : vector<1x1xf32> to vector<8x128xf32>
    %c0_32 = arith.constant 0 : index
    %c0_33 = arith.constant 0 : index
    %62 = vector.load %arg11[%c0_32, %c0_33] : memref<8x128xf32, #tpu.memory_space<vmem>>, vector<8x128xf32>
    tpu.vector_store %arg11[%c0_32, %c0_33], %61 {strides = array<i32>} : memref<8x128xf32, #tpu.memory_space<vmem>>, vector<8x128xf32>,
    return
  }
  func.func @transform_0(%arg0: i32) -> (i32, i32) {
    %c0_i32 = arith.constant 0 : i32
    %c0_i32_0 = arith.constant 0 : i32
    return %arg0, %c0_i32 : i32, i32
  }
  func.func @transform_1(%arg0: i32) -> (i32, i32) {
    %c0_i32 = arith.constant 0 : i32
    %c0_i32_0 = arith.constant 0 : i32
    %c0_i32_1 = arith.constant 0 : i32
    return %c0_i32, %c0_i32_0 : i32, i32
  }
  func.func @transform_2(%arg0: i32) -> (i32, i32) {
    %c0_i32 = arith.constant 0 : i32
    %c0_i32_0 = arith.constant 0 : i32
    %c0_i32_1 = arith.constant 0 : i32
    return %c0_i32, %c0_i32_0 : i32, i32
  }
  func.func @transform_3(%arg0: i32) -> (i32, i32) {
    %c0_i32 = arith.constant 0 : i32
    %c0_i32_0 = arith.constant 0 : i32
    %c0_i32_1 = arith.constant 0 : i32
    return %c0_i32, %c0_i32_0 : i32, i32
  }
  func.func @transform_4(%arg0: i32) -> (i32, i32) {
    %c0_i32 = arith.constant 0 : i32
    %c0_i32_0 = arith.constant 0 : i32
    %c0_i32_1 = arith.constant 0 : i32
    return %c0_i32, %c0_i32_0 : i32, i32
  }
  func.func @transform_5(%arg0: i32) -> (i32, i32) {
    %c0_i32 = arith.constant 0 : i32
    %c0_i32_0 = arith.constant 0 : i32
    %c0_i32_1 = arith.constant 0 : i32
    return %c0_i32, %c0_i32_0 : i32, i32
  }
  func.func @transform_6(%arg0: i32) -> (i32, i32) {
    %c0_i32 = arith.constant 0 : i32
    %c0_i32_0 = arith.constant 0 : i32
    %c0_i32_1 = arith.constant 0 : i32
    return %c0_i32, %c0_i32_0 : i32, i32
  }
  func.func @transform_7(%arg0: i32) -> (i32, i32) {
    %c0_i32 = arith.constant 0 : i32
    %c0_i32_0 = arith.constant 0 : i32
    return %arg0, %c0_i32 : i32, i32
  }
  func.func @transform_8(%arg0: i32) -> (i32, i32) {
    %c0_i32 = arith.constant 0 : i32
    %c0_i32_0 = arith.constant 0 : i32
    return %arg0, %c0_i32 : i32, i32
  }
  func.func @transform_9(%arg0: i32) -> (i32, i32) {
    %c0_i32 = arith.constant 0 : i32
    %c0_i32_0 = arith.constant 0 : i32
    return %arg0, %c0_i32 : i32, i32
  }
  func.func @transform_10(%arg0: i32) -> (i32, i32) {
    %c0_i32 = arith.constant 0 : i32
    %c0_i32_0 = arith.constant 0 : i32
    return %arg0, %c0_i32 : i32, i32
  }
}

</mosaic_0001>

<bundles_post_ra>
// kernel: tpu_custom_call.1
= control target key start
LH: loop header
LB: loop body
LE: loop exit
PB: predicated region body
PF: predicated region fallthrough
CT: control target
= control target key end

     0   :  { %16 = vsyncpa [#allocation3], 0  ;;  %s993_s0 = inlined_call_operand.vmem [shape: bf16[8,128], index: 0, kind: input, shape index: {}]   ;;  %s994_s1 = inlined_call_operand.hbm [shape: bf16[128,128], index: 1, kind: input, shape index: {}]   ;;  %s995_s2 = inlined_call_operand.vmem [shape: f32[1,128], index: 2, kind: input, shape index: {}]   ;;  %s996_s3 = inlined_call_operand.hbm [shape: bf16[128,128], index: 3, kind: input, shape index: {}]   ;;  %s997_s4 = inlined_call_operand.vmem [shape: f32[1,128], index: 4, kind: input, shape index: {}]   ;;  %s998_s5 = inlined_call_operand.hbm [shape: bf16[128,128], index: 5, kind: input, shape index: {}]   ;;  %s999_s6 = inlined_call_operand.vmem [shape: f32[1,128], index: 6, kind: input, shape index: {}]   ;;  %s1000_s7 = inlined_call_operand.vmem [shape: s32[8,1], index: 7, kind: input, shape index: {}]   ;;  %s1001_s8 = inlined_call_operand.hbm [shape: bf16[8,128], index: 8, kind: output, shape index: {0}]   ;;  %s1002_s9 = inlined_call_operand.hbm [shape: bf16[8,128], index: 9, kind: output, shape index: {1}]   ;;  %s1003_s10 = inlined_call_operand.hbm [shape: f32[8,128], index: 10, kind: output, shape index: {2}]  }
   0x1   :  { %17 = vsyncpa [#allocation6], 0 }
   0x2   :  { %18 = vsyncpa [#allocation4], 0 }
   0x3   :  { %19 = vsyncpa [#allocation10], 0  ;;  %s792_s13 = smov [#allocation5]   ;;  %s793_s15 = smov [#allocation2]  }
   0x4   :  { %s41_s14 = sshll.u32 %s792_s13, 4  ;;  %s27_s16 = sshll.u32 %s793_s15, 4  ;;  %s42_s14 = int_to_ptr.vmem [resolvable:$true] %s41_s14  ;;  %s858_s16 = int_to_ptr.vmem [resolvable:$true] %s27_s16 }
   0x5   :  { %s652_s19 = scalar_lea.hbm %s996_s3, 1024 }
   0x6   :  { %p653_p0 = scmp.ne.s32.totalorder %s996_s3, %s652_s19  ;;  %p656_p1 = scmp.lt.u32.totalorder %s652_s19, %s996_s3 }
   0x8   :  { %p658_p2 = pnand %p656_p1, %p653_p0 }
   0xa   :  { %661 = shalt.err (!%p658_p2)
}
   0xb   :  { %s662_s24 = scalar_lea.vmem %s42_s14, 1024  ;;  %p667_p4 = scmp.lt.s32.totalorder %s42_s14, %s42_s14 }
   0xc   :  { %p663_p3 = scmp.ne.s32.totalorder %s42_s14, %s662_s24  ;;  %p668_p5 = scmp.lt.s32.totalorder %s662_s24, %s662_s24 }
   0xe   :  { %p669_p6 = por %p668_p5, %p667_p4 }
  0x10   :  { %p670_p7 = pnand %p669_p6, %p663_p3 }
  0x12   :  { %673 = shalt.err (!%p670_p7)
}
  0x13   :  { %s794_s25 = smov 64   ;;  %s795_s26 = smov 4  }
  0x14   :  { %47 = dma.hbm_to_vmem [thread:$0]  %s996_s3, 1024, %s42_s14, [#allocation6], %s794_s25, %s794_s25, %s795_s26  }
  0x15   :  { %s674_s11 = scalar_lea.hbm %s994_s1, 1024 }
  0x16   :  { %p675_p8 = scmp.ne.s32.totalorder %s994_s1, %s674_s11  ;;  %p678_p9 = scmp.lt.u32.totalorder %s674_s11, %s994_s1 }
  0x18   :  { %p680_p10 = pnand %p678_p9, %p675_p8 }
  0x1a   :  { %683 = shalt.err (!%p680_p10)
}
  0x1b   :  { %s684_s18 = scalar_lea.vmem %s858_s16, 1024  ;;  %p689_p12 = scmp.lt.s32.totalorder %s858_s16, %s858_s16 }
  0x1c   :  { %p685_p11 = scmp.ne.s32.totalorder %s858_s16, %s684_s18  ;;  %p690_p13 = scmp.lt.s32.totalorder %s684_s18, %s684_s18 }
  0x1e   :  { %p691_p0 = por %p690_p13, %p689_p12 }
  0x20   :  { %p692_p1 = pnand %p691_p0, %p685_p11 }
  0x22   :  { %695 = shalt.err (!%p692_p1)
}
  0x23   :  { %33 = dma.hbm_to_vmem [thread:$0]  %s994_s1, 1024, %s858_s16, [#allocation3], %s794_s25, %s794_s25, %s795_s26  }
  0x24   :  { %s796_s19 = smov [#allocation7]   ;;  %s696_s23 = scalar_lea.hbm %s998_s5, 1024 }
  0x25   :  { %s55_s20 = sshll.u32 %s796_s19, 4  ;;  %p697_p2 = scmp.ne.s32.totalorder %s998_s5, %s696_s23  ;;  %s56_s20 = int_to_ptr.vmem [resolvable:$true] %s55_s20 }
  0x26   :  { %p700_p3 = scmp.lt.u32.totalorder %s696_s23, %s998_s5 }
  0x28   :  { %p702_p4 = pnand %p700_p3, %p697_p2 }
  0x2a   :  { %705 = shalt.err (!%p702_p4)
}
  0x2b   :  { %s706_s30 = scalar_lea.vmem %s56_s20, 1024  ;;  %p711_p6 = scmp.lt.s32.totalorder %s56_s20, %s56_s20 }
  0x2c   :  { %p707_p5 = scmp.ne.s32.totalorder %s56_s20, %s706_s30  ;;  %p712_p7 = scmp.lt.s32.totalorder %s706_s30, %s706_s30 }
  0x2e   :  { %p713_p8 = por %p712_p7, %p711_p6 }
  0x30   :  { %p714_p9 = pnand %p713_p8, %p707_p5 }
  0x32   :  { %717 = shalt.err (!%p714_p9)
}
  0x33   :  { %61 = dma.hbm_to_vmem [thread:$0]  %s998_s5, 1024, %s56_s20, [#allocation6], %s794_s25, %s794_s25, %s795_s26  }
  0x34   :  { %784 = dma.done.wait [#allocation3], 1024  }
  0x35   :  { %785 = vsyncadd [#allocation3], 4294966272 }
  0x36   :  { %786 = dma.done.wait [#allocation6], 2048  }
  0x37   :  { %787 = vsyncadd [#allocation6], 4294965248  ;;  %v797_v0 = vmov 0.0   ;;  %vm798_vm0 = vmmov 0   ;;  %v624_v1 = vld [vmem:[#allocation2] sm:$0xff]   ;;  %v625_v2 = vld [vmem:[#allocation2 + $0x8] sm:$0xff]   ;;  %v417_v43 = vlaneseq }
  0x38   :  { %552 = vmatprep.subr.bf16.mxu0 %v797_v0  ;;  %568 = vmatprep.mubr.msk.bf16.mxu0 %vm798_vm0, %v797_v0  ;;  %v626_v3 = vld [vmem:[#allocation2 + $0x10] sm:$0xff]   ;;  %v632_v4 = vld [vmem:[#allocation5] sm:$0xff]   ;;  %v627_v5 = vld [vmem:[#allocation2 + $0x18] sm:$0xff]   ;;  %v799_v42 = vmov 0   ;;  %s801_s18 = smov [#allocation8]  }
  0x39   :  { %572 = vmatprep.subr.bf16.mxu1 %v797_v0  ;;  %588 = vmatprep.mubr.msk.bf16.mxu1 %vm798_vm0, %v797_v0  ;;  %v633_v6 = vld [vmem:[#allocation5 + $0x8] sm:$0xff]   ;;  %v628_v7 = vld [vmem:[#allocation2 + $0x20] sm:$0xff]   ;;  %v634_v8 = vld [vmem:[#allocation5 + $0x10] sm:$0xff]   ;;  %v418_v44 = vand.u32 127, %v417_v43  ;;  %s461_s3 = sshll.u32 %s801_s18, 4  ;;  %s462_s3 = int_to_ptr.vmem [resolvable:$true] %s461_s3 }
  0x3a   :  { %553 = vmatpush3.bf16.msra.mxu0 %v624_v1  ;;  %573 = vmatpush3.bf16.msra.mxu1 %v632_v4  ;;  %v629_v9 = vld [vmem:[#allocation2 + $0x28] sm:$0xff]   ;;  %v635_v10 = vld [vmem:[#allocation5 + $0x18] sm:$0xff]   ;;  %v630_v11 = vld [vmem:[#allocation2 + $0x30] sm:$0xff]  }
  0x3b   :  { %554 = vmatprep.subr.bf16.mxu0 %v797_v0  ;;  %574 = vmatprep.subr.bf16.mxu1 %v797_v0  ;;  %v636_v12 = vld [vmem:[#allocation5 + $0x20] sm:$0xff]   ;;  %v631_v13 = vld [vmem:[#allocation2 + $0x38] sm:$0xff]   ;;  %v637_v14 = vld [vmem:[#allocation5 + $0x28] sm:$0xff]   ;;  %vm419_vm1 = vcmp.lt.s32.totalorder %v418_v44, 2 }
  0x3c   :  { %v76_v15 = vld [vmem:[%s993_s0] sm:$0xf]  ;;  %v638_v16 = vld [vmem:[#allocation5 + $0x30] sm:$0xff]   ;;  %v639_v17 = vld [vmem:[#allocation5 + $0x38] sm:$0xff]   ;;  %623 = vset.pattern.permute.xlu0 %v799_v42 }
  0x3d   :  { %v640_v18 = vld [vmem:[#allocation7] sm:$0xff]   ;;  %v641_v19 = vld [vmem:[#allocation7 + $0x8] sm:$0xff]   ;;  %v642_v20 = vld [vmem:[#allocation7 + $0x10] sm:$0xff]  }
  0x3e   :  { %555 = vmatpush3.bf16.msra.mxu0 %v625_v2  ;;  %575 = vmatpush3.bf16.msra.mxu1 %v633_v6  ;;  %v643_v21 = vld [vmem:[#allocation7 + $0x18] sm:$0xff]   ;;  %v644_v22 = vld [vmem:[#allocation7 + $0x20] sm:$0xff]   ;;  %v645_v23 = vld [vmem:[#allocation7 + $0x28] sm:$0xff]  }
  0x3f   :  { %556 = vmatprep.subr.bf16.mxu0 %v797_v0  ;;  %576 = vmatprep.subr.bf16.mxu1 %v797_v0  ;;  %v498_v24 = vld [vmem:[%s995_s2] ss:$0 sm:$0xff]  ;;  %v646_v32 = vld [vmem:[#allocation7 + $0x30] sm:$0xff]   ;;  %v647_v33 = vld [vmem:[#allocation7 + $0x38] sm:$0xff]  }
  0x40   :  { %v507_v34 = vld [vmem:[%s997_s4] ss:$0 sm:$0xff] }
  0x41   :  { %v516_v45 = vld [vmem:[%s999_s6] ss:$0 sm:$0xff]  ;;  %s800_s6 = smov [#allocation9]  }
  0x42   :  { %557 = vmatpush3.bf16.msra.mxu0 %v626_v3  ;;  %577 = vmatpush3.bf16.msra.mxu1 %v634_v8  ;;  %v432_v53 = vld [vmem:[%s1000_s7] sm:$0xff]  ;;  %s471_s17 = sshll.u32 %s800_s6, 4  ;;  %s472_s17 = int_to_ptr.vmem [resolvable:$true] %s471_s17 }
  0x43   :  { %558 = vmatprep.subr.bf16.mxu0 %v797_v0  ;;  %578 = vmatprep.subr.bf16.mxu1 %v797_v0  ;;  %s718_s7 = scalar_lea.vmem %s472_s17, 64  ;;  %p723_p11 = scmp.lt.s32.totalorder %s472_s17, %s472_s17 }
  0x44   :  { %p719_p10 = scmp.ne.s32.totalorder %s472_s17, %s718_s7  ;;  %p724_p12 = scmp.lt.s32.totalorder %s718_s7, %s718_s7 }
  0x46   :  { %559 = vmatpush3.bf16.msra.mxu0 %v627_v5  ;;  %579 = vmatpush3.bf16.msra.mxu1 %v635_v10  ;;  %p725_p13 = por %p724_p12, %p723_p11 }
  0x47   :  { %560 = vmatprep.subr.bf16.mxu0 %v797_v0  ;;  %580 = vmatprep.subr.bf16.mxu1 %v797_v0 }
  0x48   :  { %p726_p0 = pnand %p725_p13, %p719_p10 }
  0x4a   :  { %561 = vmatpush3.bf16.msra.mxu0 %v628_v7  ;;  %581 = vmatpush3.bf16.msra.mxu1 %v636_v12 }
  0x4b   :  { %562 = vmatprep.subr.bf16.mxu0 %v797_v0  ;;  %582 = vmatprep.subr.bf16.mxu1 %v797_v0 }
  0x4e   :  { %563 = vmatpush3.bf16.msra.mxu0 %v629_v9  ;;  %583 = vmatpush3.bf16.msra.mxu1 %v637_v14 }
  0x4f   :  { %564 = vmatprep.subr.bf16.mxu0 %v797_v0  ;;  %584 = vmatprep.subr.bf16.mxu1 %v797_v0 }
  0x52   :  { %565 = vmatpush3.bf16.msra.mxu0 %v630_v11  ;;  %585 = vmatpush3.bf16.msra.mxu1 %v638_v16 }
  0x53   :  { %566 = vmatprep.subr.bf16.mxu0 %v797_v0  ;;  %586 = vmatprep.subr.bf16.mxu1 %v797_v0 }
  0x56   :  { %567 = vmatpush3.bf16.msra.mxu0 %v631_v13  ;;  %587 = vmatpush3.bf16.msra.mxu1 %v639_v17 }
  0x57   :  { %592 = vmatprep.subr.bf16.mxu0 %v797_v0 }
  0x59   :  { %569 = vmatmul.mubr.bf16.vlgmr.msra.gmra.mrb[0].mxu0 %v76_v15 }
  0x5a   :  { %608 = vmatprep.mubr.msk.bf16.mxu0 %vm798_vm0, %v797_v0  ;;  %593 = vmatpush3.bf16.msra.mxu0 %v640_v18 }
  0x5b   :  { %594 = vmatprep.subr.bf16.mxu0 %v797_v0 }
  0x5e   :  { %595 = vmatpush3.bf16.msra.mxu0 %v641_v19 }
  0x5f   :  { %596 = vmatprep.subr.bf16.mxu0 %v797_v0 }
  0x62   :  { %597 = vmatpush3.bf16.msra.mxu0 %v642_v20 }
  0x63   :  { %598 = vmatprep.subr.bf16.mxu0 %v797_v0 }
  0x66   :  { %599 = vmatpush3.bf16.msra.mxu0 %v643_v21 }
  0x67   :  { %600 = vmatprep.subr.bf16.mxu0 %v797_v0 }
  0x6a   :  { %601 = vmatpush3.bf16.msra.mxu0 %v644_v22 }
  0x6b   :  { %602 = vmatprep.subr.bf16.mxu0 %v797_v0 }
  0x6e   :  { %603 = vmatpush3.bf16.msra.mxu0 %v645_v23 }
  0x6f   :  { %604 = vmatprep.subr.bf16.mxu0 %v797_v0 }
  0x72   :  { %605 = vmatpush3.bf16.msra.mxu0 %v646_v32 }
  0x73   :  { %606 = vmatprep.subr.bf16.mxu0 %v797_v0 }
  0x76   :  { %607 = vmatpush3.bf16.msra.mxu0 %v647_v33 }
 0x12c   :  { %v182_v25 = vpop.f32.mrb[0].mxu0 }
 0x12d   :  { %v183_v26 = vadd.f32 %v498_v24, %v182_v25  ;;  %v570_v27 = vpop.f32.mrb[1].mxu0 }
 0x12e   :  { %v185_v28 = vpop.f32.mrb[2].mxu0 }
 0x12f   :  { %v188_v29 = vmax.f32 %v183_v26, 0.0  ;;  %v571_v30 = vpop.f32.mrb[3].mxu0 }
 0x131   :  { %v189_v31 = vpack.c.bf16 %v188_v29, %v188_v29 }
 0x133   :  { %190 = vst [vmem:[#allocation8] sm:$0xf] %v189_v31  ;;  %589 = vmatmul.mubr.bf16.vlgmr.msra.gmra.mrb[0].mxu1 %v189_v31 }
 0x206   :  { %v296_v35 = vpop.f32.mrb[0].mxu1 }
 0x207   :  { %v297_v36 = vadd.f32 %v507_v34, %v296_v35  ;;  %v590_v37 = vpop.f32.mrb[1].mxu1 }
 0x208   :  { %v299_v38 = vpop.f32.mrb[2].mxu1 }
 0x209   :  { %v302_v39 = vmax.f32 %v297_v36, 0.0  ;;  %v591_v40 = vpop.f32.mrb[3].mxu1 }
 0x20b   :  { %v303_v41 = vpack.c.bf16 %v302_v39, %v302_v39 }
 0x20d   :  { %609 = vmatmul.mubr.bf16.vlgmr.msra.gmra.mrb[4].mxu0 %v303_v41 }
 0x2e0   :  { %v409_v46 = vpop.f32.mrb[4].mxu0 }
 0x2e1   :  { %v410_v47 = vadd.f32 %v516_v45, %v409_v46  ;;  %v610_v48 = vpop.f32.mrb[5].mxu0 }
 0x2e2   :  { %v412_v49 = vpop.f32.mrb[6].mxu0 }
 0x2e3   :  { %v611_v50 = vpop.f32.mrb[7].mxu0  ;;  %v420_v51 = vsel %vm419_vm1, %v410_v47, -1e+30  ;;  %v415_v52 = vpack.c.bf16 %v410_v47, %v410_v47 }
 0x2e4   :  { %421 = vmax.xlane.f32.xlu0 %v420_v51 }
 0x2e5   :  { %416 = vst [vmem:[#allocation9] sm:$0xf] %v415_v52 }
 0x2fa   :  { %434 = vperm.xlu0 %623, %v432_v53  }
 0x371   :  { %v422_v54 = vpop.xlane.xlu0 %421 }
 0x372   :  { %v423_v55 = vsub.f32 %v420_v51, %v422_v54 }
 0x374   :  { %v424_v56 = vmul.f32 1.442695, %v423_v55 }
 0x376   :  { %648 = vpow2.f32 %v424_v56 }
 0x379   :  { %v435_v57 = vpop.permute.xlu0 %434 }
 0x37a   :  { %vm436_vm2 = vcmp.eq.s32.totalorder %v418_v44, %v435_v57 }
 0x37b   :  { %v437_v60 = vsel %vm436_vm2, %v410_v47, 0.0 }
 0x380   :  { %v649_v58 = vpop.eup %648 }
 0x381   :  { %v426_v59 = vsel %vm419_vm1, %v649_v58, 0.0 }
 0x382   :  { %427 = vadd.xlane.f32.xlu1 %v426_v59 }
 0x386   :  { %438 = vadd.xlane.f32.xlu1 %v437_v60 }
 0x387   :  { %729 = shalt.err (!%p726_p0)
}
 0x388   :  { %s730_s20 = scalar_lea.hbm %s1002_s9, 64 }
 0x389   :  { %p731_p1 = scmp.ne.s32.totalorder %s1002_s9, %s730_s20  ;;  %p734_p2 = scmp.lt.u32.totalorder %s730_s20, %s1002_s9 }
 0x38b   :  { %p736_p3 = pnand %p734_p2, %p731_p1 }
 0x38d   :  { %739 = shalt.err (!%p736_p3)
}
 0x38e   :  { %474 = dma.vmem_to_hbm [thread:$0]  %s472_s17, 64, %s1002_s9, [#allocation10]  }
 0x38f   :  { %s740_s29 = scalar_lea.vmem %s462_s3, 64  ;;  %p745_p5 = scmp.lt.s32.totalorder %s462_s3, %s462_s3 }
 0x390   :  { %p741_p4 = scmp.ne.s32.totalorder %s462_s3, %s740_s29  ;;  %p746_p6 = scmp.lt.s32.totalorder %s740_s29, %s740_s29 }
 0x392   :  { %p747_p7 = por %p746_p6, %p745_p5 }
 0x394   :  { %p748_p8 = pnand %p747_p7, %p741_p4 }
 0x396   :  { %751 = shalt.err (!%p748_p8)
}
 0x397   :  { %s752_s16 = scalar_lea.hbm %s1001_s8, 64 }
 0x398   :  { %p753_p9 = scmp.ne.s32.totalorder %s1001_s8, %s752_s16  ;;  %p756_p10 = scmp.lt.u32.totalorder %s752_s16, %s1001_s8 }
 0x39a   :  { %p758_p11 = pnand %p756_p10, %p753_p9 }
 0x39c   :  { %761 = shalt.err (!%p758_p11)
}
 0x39d   :  { %464 = dma.vmem_to_hbm [thread:$0]  %s462_s3, 64, %s1001_s8, [#allocation4]  }
 0x39e   :  { %s802_s12 = smov [#allocation11]  }
 0x39f   :  { %s481_s2 = sshll.u32 %s802_s12, 4  ;;  %s482_s2 = int_to_ptr.vmem [resolvable:$true] %s481_s2 }
 0x3a0   :  { %s762_s13 = scalar_lea.vmem %s482_s2, 128  ;;  %p767_p13 = scmp.lt.s32.totalorder %s482_s2, %s482_s2 }
 0x3a1   :  { %p763_p12 = scmp.ne.s32.totalorder %s482_s2, %s762_s13  ;;  %p768_p0 = scmp.lt.s32.totalorder %s762_s13, %s762_s13 }
 0x3a3   :  { %p769_p1 = por %p768_p0, %p767_p13 }
 0x3a5   :  { %p770_p2 = pnand %p769_p1, %p763_p12 }
 0x40f   :  { %v428_v61 = vpop.xlane.xlu1 %427 }
 0x410   :  { %650 = vlog2.f32 %v428_v61 }
 0x413   :  { %v439_v1 = vpop.xlane.xlu1 %438 }
 0x41a   :  { %v651_v62 = vpop.eup %650 }
 0x41b   :  { %v430_v63 = vmul.f32 0.6931472, %v651_v62 }
 0x41d   :  { %v431_v0 = vadd.f32 %v430_v63, %v422_v54 }
 0x41f   :  { %v446_v2 = vsub.f32 %v431_v0, %v439_v1 }
 0x421   :  { %v448_v3 = vrot.slane %v446_v2, 4 }
 0x423   :  { %v449_v4 = vadd.f32 %v448_v3, %v446_v2 }
 0x425   :  { %v450_v5 = vrot.slane %v449_v4, 2 }
 0x427   :  { %v451_v6 = vadd.f32 %v450_v5, %v449_v4 }
 0x429   :  { %v452_v7 = vrot.slane %v451_v6, 1 }
 0x42b   :  { %v453_v8 = vadd.f32 %v452_v7, %v451_v6 }
 0x42d   :  { %454 = vst [vmem:[#allocation11] sm:$0xff] %v453_v8 }
 0x42e   :  { %773 = shalt.err (!%p770_p2)
}
 0x42f   :  { %s774_s15 = scalar_lea.hbm %s1003_s10, 128 }
 0x430   :  { %p775_p3 = scmp.ne.s32.totalorder %s1003_s10, %s774_s15  ;;  %p778_p4 = scmp.lt.u32.totalorder %s774_s15, %s1003_s10 }
 0x432   :  { %p780_p5 = pnand %p778_p4, %p775_p3 }
 0x434   :  { %783 = shalt.err (!%p780_p5)
}
 0x435   :  { %484 = dma.vmem_to_hbm [thread:$0]  %s482_s2, 128, %s1003_s10, [#allocation10]  }
 0x436   :  { %788 = dma.done.wait [#allocation4], 64  }
 0x437   :  { %789 = vsyncadd [#allocation4], 4294967232 }
 0x438   :  { %790 = dma.done.wait [#allocation10], 192  }
 0x439   :  { %791 = vsyncadd [#allocation10], 4294967104 }
 0x43a   :  { %494 = vsyncpa [#allocation3], 1 }
 0x43b   :  { %495 = vsyncpa [#allocation6], 1 }
 0x43c   :  { %496 = vsyncpa [#allocation4], 1 }
 0x43d   :  { %497 = vsyncpa [#allocation10], 1 }

</bundles_post_ra>
